<compile_context>
chip_gen: v5e
topology: v5e:2x2
jax: 0.10.0
libtpu: 0.0.40
codegen_flags: <defaults>
</compile_context>

<pallas_src>
import functools

import jax
import jax.numpy as jnp
from jax.experimental import pallas as pl
from jax.experimental.pallas import tpu as pltpu


def _round_up(x, m):
    return (x + m - 1) // m * m


def _patch_proj_kernel(x_ref, w_ref, b_ref, o_ref):
    # x_ref: (K, tm)  bf16 patch columns (one column per patch)
    # w_ref: (tn, K)  bf16 conv weight, native [hidden, C*P*P] layout
    # b_ref: (tn, 1)  f32 bias
    # o_ref: (tn, tm) output block (hidden on sublanes, patches on lanes)
    acc = jnp.dot(w_ref[...], x_ref[...], preferred_element_type=jnp.float32)
    o_ref[...] = (acc + b_ref[...]).astype(o_ref.dtype)


def _tile_vmem_bytes(tm, tn, k, out_itemsize):
    # double-buffered input/weight/output blocks + lane-padded bias block
    x_blk = k * tm * 2
    w_blk = tn * k * 2
    o_blk = tn * tm * out_itemsize
    b_blk = tn * 128 * 4
    return 2 * (x_blk + w_blk + o_blk + b_blk)


@functools.partial(jax.jit, static_argnames=("patch_size", "out_dtype"))
def patch_embeddings_forward(x, weight, bias, *, patch_size, out_dtype=None):
    """x: [B, C, H, W] (NCHW). weight: [hidden, C, P, P]. bias: [hidden].
    Returns [B, hidden, H/P, W/P] (NCHW), same as nn.Conv2d(stride=P, k=P).
    out_dtype=None keeps x.dtype; pass jnp.bfloat16 for memory-bound deployments."""
    B, C, H, W = x.shape
    P = patch_size
    hidden = weight.shape[0]
    Hg, Wg = H // P, W // P

    M = B * Hg * Wg              # number of patches
    K = C * P * P                # flattened patch length
    K_pad = _round_up(K, 128)    # aligned lane loads / clean MXU contraction
    N = hidden
    N_pad = _round_up(N, 128)    # lane-dense sublane tiling of the weight
    out_dtype = x.dtype if out_dtype is None else out_dtype
    out_itemsize = jnp.dtype(out_dtype).itemsize

    # --- layout-only glue ----------------------------------------------------
    # Cast to bf16 first (halves the transpose's read bytes), then extract the
    # non-overlapping PxP patches directly in (K, M) layout so the kernel does
    # a plain NN matmul and emits (hidden, patches) with no transposes at all.
    # TODO(synk): extract patches in-kernel (grid over (B, Hg), XLU shuffles)
    # to avoid materializing the patch matrix in HBM entirely.
    xb = x.astype(jnp.bfloat16)
    patches = xb.reshape(B, C, Hg, P, Wg, P)
    patches = patches.transpose(1, 3, 5, 0, 2, 4)        # (C, P, P, B, Hg, Wg)
    patches = patches.reshape(K, M)
    if K_pad != K:
        patches = jnp.pad(patches, ((0, K_pad - K), (0, 0)))

    # conv weight stays in its native [hidden, C*P*P] layout; zero-pad K / N.
    w_mat = weight.reshape(N, K).astype(jnp.bfloat16)
    b_mat = bias.astype(jnp.float32).reshape(N, 1)
    if K_pad != K or N_pad != N:
        w_mat = jnp.pad(w_mat, ((0, N_pad - N), (0, K_pad - K)))
    if N_pad != N:
        b_mat = jnp.pad(b_mat, ((0, N_pad - N), (0, 0)))

    # --- tiling ----------------------------------------------------------------
    # tm (patches per tile = output lane dim): multiple of 256 fills the
    # v6e/v7x MXU and gives unmasked lane-dense stores; aim for >=2 tiles so
    # both v7x TensorCores get work.  Clamped so we never tile far past M.
    tm = min(1024, max(256, _round_up(pl.cdiv(M, 2), 256)))
    tm = min(tm, _round_up(M, 128))
    # tn: keep the whole weight resident for realistic SigLIP hiddens; tile N
    # only for very wide layers.
    tn = N_pad if N_pad <= 2048 else 1024
    # Keep the tile footprint well inside v7x's 64 MiB physical VMEM.
    while _tile_vmem_bytes(tm, tn, K_pad, out_itemsize) > (36 << 20) and tm > 256:
        tm -= 256
    # TODO(synk): add a K-tiling fallback for very large C*P*P (the (tn, K) and
    # (K, tm) blocks must currently fit VMEM in one shot).
    vmem_limit = min(
        max(_tile_vmem_bytes(tm, tn, K_pad, out_itemsize) + (8 << 20), 16 << 20),
        60 << 20,
    )

    m_tiles = pl.cdiv(M, tm)
    n_tiles = pl.cdiv(N_pad, tn)

    if n_tiles == 1:
        # Common path: 1-D grid over patches.  Weight/bias block index is
        # constant, so it is fetched once per core and stays resident.
        grid = (m_tiles,)
        in_specs = [
            pl.BlockSpec((K_pad, tm), lambda i: (0, i)),
            pl.BlockSpec((tn, K_pad), lambda i: (0, 0)),
            pl.BlockSpec((tn, 1), lambda i: (0, 0)),
        ]
        out_specs = pl.BlockSpec((tn, tm), lambda i: (0, i))
        dim_sem = ("parallel",)
    else:
        # Wide-hidden fallback: N outermost, M innermost so the (tn, K) weight
        # block stays resident across the entire inner M loop (no re-DMA).
        grid = (n_tiles, m_tiles)
        in_specs = [
            pl.BlockSpec((K_pad, tm), lambda n, m: (0, m)),
            pl.BlockSpec((tn, K_pad), lambda n, m: (n, 0)),
            pl.BlockSpec((tn, 1), lambda n, m: (n, 0)),
        ]
        out_specs = pl.BlockSpec((tn, tm), lambda n, m: (n, m))
        dim_sem = ("parallel", "parallel")

    cost = pl.CostEstimate(
        flops=2 * M * K_pad * N_pad,
        transcendentals=0,
        bytes_accessed=(
            K_pad * M * 2                 # bf16 patches
            + N_pad * K_pad * 2           # bf16 weight
            + N_pad * 4                   # f32 bias
            + N_pad * M * out_itemsize    # output
        ),
    )

    out = pl.pallas_call(
        _patch_proj_kernel,
        out_shape=jax.ShapeDtypeStruct((N_pad, M), out_dtype),
        grid_spec=pltpu.PrefetchScalarGridSpec(
            num_scalar_prefetch=0,
            grid=grid,
            in_specs=in_specs,
            out_specs=out_specs,
        ),
        compiler_params=pltpu.CompilerParams(
            dimension_semantics=dim_sem,
            vmem_limit_bytes=vmem_limit,
        ),
        cost_estimate=cost,
    )(patches, w_mat, b_mat)

    # (hidden_pad, B*Hg*Wg) -> NCHW.  Only a leading-dim swap: the Hg*Wg minor
    # block stays contiguous, so this is a cheap contiguous copy rather than a
    # full HBM re-layout.
    out = out[:N].reshape(N, B, Hg, Wg).transpose(1, 0, 2, 3)
    return out


if __name__ == "__main__":
    # small config consistent with the module's forward
    batch = 2
    num_channels = 4
    image_size = 16
    patch_size = 4
    hidden_size = 32

    key = jax.random.PRNGKey(0)
    kx, kw, kb = jax.random.split(key, 3)

    x = jax.random.normal(
        kx, (batch, num_channels, image_size, image_size), dtype=jnp.float32
    )
    weight = jax.random.normal(
        kw, (hidden_size, num_channels, patch_size, patch_size), dtype=jnp.float32
    ) * 0.02
    bias = jax.random.normal(kb, (hidden_size,), dtype=jnp.float32) * 0.02

    out = patch_embeddings_forward(x, weight, bias, patch_size=patch_size)
    out = jax.block_until_ready(out)

    expected_shape = (
        batch,
        hidden_size,
        image_size // patch_size,
        image_size // patch_size,
    )
    assert out.shape == expected_shape, (out.shape, expected_shape)
    assert out.dtype == x.dtype, out.dtype

    # reference check against lax conv (same semantics as nn.Conv2d).
    # tolerance loosened because the kernel quantizes matmul inputs to bf16
    # (accumulation stays f32).
    ref = jax.lax.conv_general_dilated(
        x, weight,
        window_strides=(patch_size, patch_size),
        padding="VALID",
        dimension_numbers=("NCHW", "OIHW", "NCHW"),
    ) + bias.reshape(1, hidden_size, 1, 1)
    assert jnp.allclose(out, ref, atol=2e-2, rtol=2e-2), float(
        jnp.max(jnp.abs(out - ref))
    )

    # perf-recommended bf16-output path (v6e/v7x): halves output HBM bytes.
    out_bf16 = patch_embeddings_forward(
        x, weight, bias, patch_size=patch_size, out_dtype=jnp.bfloat16
    )
    out_bf16 = jax.block_until_ready(out_bf16)
    assert out_bf16.shape == expected_shape and out_bf16.dtype == jnp.bfloat16
    assert jnp.allclose(out_bf16.astype(jnp.float32), ref, atol=3e-2, rtol=3e-2)

    print("KERNEL_OK")
</pallas_src>

<mosaic_0001>
module attributes {stable_mosaic.version = 11 : i64} {
  func.func @_patch_proj_kernel(%arg0: i32, %arg1: memref<128x128xbf16, #tpu.memory_space<vmem>>, %arg2: memref<128x128xbf16, #tpu.memory_space<vmem>>, %arg3: memref<128x1xf32, #tpu.memory_space<vmem>>, %arg4: memref<128x128xf32, #tpu.memory_space<vmem>>) attributes {dimension_semantics = [#tpu.dimension_semantics<parallel>], iteration_bounds = array<i64: 1>, scalar_prefetch = 0 : i64, scratch_operands = 0 : i64, tpu.core_type = #tpu.core_type<tc>, window_params = [{transform_indices = @transform_0, window_bounds = array<i64: 128, 128>}, {pipeline_mode = #tpu.pipeline_mode<synchronous>, transform_indices = @transform_1, window_bounds = array<i64: 128, 128>}, {pipeline_mode = #tpu.pipeline_mode<synchronous>, transform_indices = @transform_2, window_bounds = array<i64: 128, 1>}, {transform_indices = @transform_3, window_bounds = array<i64: 128, 128>}]} {
    %c0 = arith.constant 0 : index
    %c0_0 = arith.constant 0 : index
    %0 = vector.load %arg2[%c0, %c0_0] : memref<128x128xbf16, #tpu.memory_space<vmem>>, vector<128x128xbf16>
    %c0_1 = arith.constant 0 : index
    %c0_2 = arith.constant 0 : index
    %1 = vector.load %arg1[%c0_1, %c0_2] : memref<128x128xbf16, #tpu.memory_space<vmem>>, vector<128x128xbf16>
    %cst = arith.constant dense<0.000000e+00> : vector<128x128xf32>
    %2 = tpu.matmul %0, %1, %cst {dimension_numbers = #tpu.dot_dimension_numbers<[1], [0], [0], [1], [0, 0, 1, 1], [], []>} : vector<128x128xbf16>, vector<128x128xbf16>, vector<128x128xf32> -> vector<128x128xf32>
    %c0_3 = arith.constant 0 : index
    %c0_4 = arith.constant 0 : index
    %3 = vector.load %arg3[%c0_3, %c0_4] : memref<128x1xf32, #tpu.memory_space<vmem>>, vector<128x1xf32>
    %4 = vector.broadcast %3 : vector<128x1xf32> to vector<128x128xf32>
    %5 = arith.addf %2, %4 : vector<128x128xf32>
    %c0_5 = arith.constant 0 : index
    %c0_6 = arith.constant 0 : index
    %6 = vector.load %arg4[%c0_5, %c0_6] : memref<128x128xf32, #tpu.memory_space<vmem>>, vector<128x128xf32>
    tpu.vector_store %arg4[%c0_5, %c0_6], %5 {strides = array<i32>} : memref<128x128xf32, #tpu.memory_space<vmem>>, vector<128x128xf32>,
    return
  }
  func.func @transform_0(%arg0: i32) -> (i32, i32) {
    %c0_i32 = arith.constant 0 : i32
    %c0_i32_0 = arith.constant 0 : i32
    return %c0_i32, %arg0 : i32, i32
  }
  func.func @transform_1(%arg0: i32) -> (i32, i32) {
    %c0_i32 = arith.constant 0 : i32
    %c0_i32_0 = arith.constant 0 : i32
    %c0_i32_1 = arith.constant 0 : i32
    return %c0_i32, %c0_i32_0 : i32, i32
  }
  func.func @transform_2(%arg0: i32) -> (i32, i32) {
    %c0_i32 = arith.constant 0 : i32
    %c0_i32_0 = arith.constant 0 : i32
    %c0_i32_1 = arith.constant 0 : i32
    return %c0_i32, %c0_i32_0 : i32, i32
  }
  func.func @transform_3(%arg0: i32) -> (i32, i32) {
    %c0_i32 = arith.constant 0 : i32
    %c0_i32_0 = arith.constant 0 : i32
    return %c0_i32, %arg0 : i32, i32
  }
}

</mosaic_0001>

<bundles_post_ra>
// kernel: patch_embeddings_forward.1
= control target key start
LH: loop header
LB: loop body
LE: loop exit
PB: predicated region body
PF: predicated region fallthrough
CT: control target
= control target key end

     0   :  { %v415_v0 = vmov 0   ;;  %s580_s2 = inlined_call_operand.vmem [shape: f32[128,1], index: 2, kind: input, shape index: {}]   ;;  %s581_s0 = inlined_call_operand.vmem [shape: bf16[128,32], index: 0, kind: input, shape index: {}]   ;;  %s582_s1 = inlined_call_operand.vmem [shape: bf16[128,128], index: 1, kind: input, shape index: {}]   ;;  %s583_s3 = inlined_call_operand.vmem [shape: f32[128,32], index: 3, kind: output, shape index: {}]  }
   0x1   :  { %412 = vset.pattern.permute.xlu0 %v415_v0  ;;  %v46_v1 = vld [vmem:[%s580_s2] sm:$0xff]  ;;  %v386_v2 = vld [vmem:[%s581_s0 + $0x38] sm:$0xff]  ;;  %413 = vset.pattern.permute.xlu1 %v415_v0  ;;  %v48_v3 = vld [vmem:[%s580_s2 + $0x10] sm:$0xff] }
   0x2   :  { %64 = vperm.xlu0 %412, %v46_v1   ;;  %414 = vset.pattern.permute.xlu2 %v415_v0  ;;  %v385_v4 = vld [vmem:[%s581_s0 + $0x30] sm:$0xff]  ;;  %v47_v5 = vld [vmem:[%s580_s2 + $0x8] sm:$0xff]  ;;  %v50_v7 = vld [vmem:[%s580_s2 + $0x20] sm:$0xff] }
   0x3   :  { %238 = vmatpush.bf16.msra.mxu0 %v386_v2  ;;  %387 = vmatpush.bf16.msra.mxu1 %v386_v2  ;;  %v384_v6 = vld [vmem:[%s581_s0 + $0x28] sm:$0xff]  ;;  %v49_v8 = vld [vmem:[%s580_s2 + $0x18] sm:$0xff]  ;;  %v383_v9 = vld [vmem:[%s581_s0 + $0x20] sm:$0xff] }
   0x4   :  { %388 = vmatpush.bf16.msra.mxu2 %v386_v2  ;;  %389 = vmatpush.bf16.msra.mxu3 %v386_v2  ;;  %v51_v10 = vld [vmem:[%s580_s2 + $0x28] sm:$0xff]  ;;  %v52_v11 = vld [vmem:[%s580_s2 + $0x30] sm:$0xff]  ;;  %v382_v12 = vld [vmem:[%s581_s0 + $0x18] sm:$0xff] }
   0x5   :  { %74 = vperm.xlu1 %413, %v48_v3   ;;  %84 = vperm.xlu2 %414, %v50_v7   ;;  %v53_v13 = vld [vmem:[%s580_s2 + $0x38] sm:$0xff]  ;;  %v381_v14 = vld [vmem:[%s581_s0 + $0x10] sm:$0xff]  ;;  %v54_v15 = vld [vmem:[%s580_s2 + $0x40] sm:$0xff] }
   0x6   :  { %v55_v16 = vld [vmem:[%s580_s2 + $0x48] sm:$0xff]  ;;  %v56_v18 = vld [vmem:[%s580_s2 + $0x50] sm:$0xff]  ;;  %v379_v19 = vld [vmem:[%s581_s0] sm:$0xff] }
   0x7   :  { %239 = vmatpush.bf16.msra.mxu0 %v385_v4  ;;  %390 = vmatpush.bf16.msra.mxu1 %v385_v4  ;;  %v380_v17 = vld [vmem:[%s581_s0 + $0x8] sm:$0xff]  ;;  %v371_v20 = vld [vmem:[%s582_s1] sm:$0xff]  ;;  %v57_v21 = vld [vmem:[%s580_s2 + $0x58] sm:$0xff] }
   0x8   :  { %391 = vmatpush.bf16.msra.mxu2 %v385_v4  ;;  %392 = vmatpush.bf16.msra.mxu3 %v385_v4  ;;  %v58_v22 = vld [vmem:[%s580_s2 + $0x60] sm:$0xff]  ;;  %v373_v23 = vld [vmem:[%s582_s1 + $0x10] sm:$0xff]  ;;  %v59_v26 = vld [vmem:[%s580_s2 + $0x68] sm:$0xff] }
   0x9   :  { %v375_v24 = vld [vmem:[%s582_s1 + $0x20] sm:$0xff]  ;;  %v377_v25 = vld [vmem:[%s582_s1 + $0x30] sm:$0xff]  ;;  %v61_v28 = vld [vmem:[%s580_s2 + $0x78] sm:$0xff] }
   0xa   :  { %69 = vperm.xlu0 %412, %v47_v5   ;;  %v60_v27 = vld [vmem:[%s580_s2 + $0x70] sm:$0xff]  ;;  %v372_v29 = vld [vmem:[%s582_s1 + $0x8] sm:$0xff]  ;;  %v374_v30 = vld [vmem:[%s582_s1 + $0x18] sm:$0xff] }
   0xb   :  { %240 = vmatpush.bf16.msra.mxu0 %v384_v6  ;;  %393 = vmatpush.bf16.msra.mxu1 %v384_v6  ;;  %v376_v31 = vld [vmem:[%s582_s1 + $0x28] sm:$0xff]  ;;  %v378_v32 = vld [vmem:[%s582_s1 + $0x38] sm:$0xff] }
   0xc   :  { %394 = vmatpush.bf16.msra.mxu2 %v384_v6  ;;  %395 = vmatpush.bf16.msra.mxu3 %v384_v6 }
   0xd   :  { %79 = vperm.xlu1 %413, %v49_v8   ;;  %89 = vperm.xlu2 %414, %v51_v10  }
   0xf   :  { %241 = vmatpush.bf16.msra.mxu0 %v383_v9  ;;  %396 = vmatpush.bf16.msra.mxu1 %v383_v9 }
  0x10   :  { %397 = vmatpush.bf16.msra.mxu2 %v383_v9  ;;  %398 = vmatpush.bf16.msra.mxu3 %v383_v9 }
  0x12   :  { %94 = vperm.xlu0 %412, %v52_v11  }
  0x13   :  { %242 = vmatpush.bf16.msra.mxu0 %v382_v12  ;;  %399 = vmatpush.bf16.msra.mxu1 %v382_v12 }
  0x14   :  { %400 = vmatpush.bf16.msra.mxu2 %v382_v12  ;;  %401 = vmatpush.bf16.msra.mxu3 %v382_v12 }
  0x15   :  { %99 = vperm.xlu1 %413, %v53_v13   ;;  %104 = vperm.xlu2 %414, %v54_v15  }
  0x17   :  { %243 = vmatpush.bf16.msra.mxu0 %v381_v14  ;;  %402 = vmatpush.bf16.msra.mxu1 %v381_v14 }
  0x18   :  { %403 = vmatpush.bf16.msra.mxu2 %v381_v14  ;;  %404 = vmatpush.bf16.msra.mxu3 %v381_v14 }
  0x1a   :  { %109 = vperm.xlu0 %412, %v55_v16  }
  0x1b   :  { %244 = vmatpush.bf16.msra.mxu0 %v380_v17  ;;  %405 = vmatpush.bf16.msra.mxu1 %v380_v17 }
  0x1c   :  { %406 = vmatpush.bf16.msra.mxu2 %v380_v17  ;;  %407 = vmatpush.bf16.msra.mxu3 %v380_v17 }
  0x1d   :  { %114 = vperm.xlu1 %413, %v56_v18   ;;  %119 = vperm.xlu2 %414, %v57_v21  }
  0x1f   :  { %245 = vmatpush.bf16.msra.mxu0 %v379_v19  ;;  %408 = vmatpush.bf16.msra.mxu1 %v379_v19 }
  0x20   :  { %409 = vmatpush.bf16.msra.mxu2 %v379_v19  ;;  %410 = vmatpush.bf16.msra.mxu3 %v379_v19 }
  0x22   :  { %124 = vperm.xlu0 %412, %v58_v22   ;;  %246 = vmatmul.bf16.vlgmr.msra.gmra.mxu0 %v371_v20 }
  0x23   :  { %256 = vmatmul.bf16.vlgmr.msra.gmra.mxu1 %v373_v23  ;;  %266 = vmatmul.bf16.vlgmr.msra.gmra.mxu2 %v375_v24 }
  0x24   :  { %276 = vmatmul.bf16.vlgmr.msra.gmra.mxu3 %v377_v25 }
  0x25   :  { %129 = vperm.xlu1 %413, %v59_v26   ;;  %134 = vperm.xlu2 %414, %v60_v27  }
  0x2a   :  { %139 = vperm.xlu0 %412, %v61_v28  }
  0x32   :  { %251 = vmatmul.bf16.gmra.mxu0 %v372_v29 }
  0x33   :  { %261 = vmatmul.bf16.gmra.mxu1 %v374_v30  ;;  %271 = vmatmul.bf16.gmra.mxu2 %v376_v31 }
  0x34   :  { %281 = vmatmul.bf16.gmra.mxu3 %v378_v32 }
  0x5f   :  { %v85_v36 = vpop.permute.xlu2 %84 }
  0x67   :  { %v90_v39 = vpop.permute.xlu2 %89 }
  0x6f   :  { %v105_v46 = vpop.permute.xlu2 %104 }
  0x74   :  { %v65_v33 = vpop.permute.xlu0 %64 }
  0x77   :  { %v75_v34 = vpop.permute.xlu1 %74  ;;  %v120_v57 = vpop.permute.xlu2 %119 }
  0x7c   :  { %v70_v35 = vpop.permute.xlu0 %69 }
  0x7f   :  { %v80_v37 = vpop.permute.xlu1 %79  ;;  %v135_v3 = vpop.permute.xlu2 %134 }
  0x84   :  { %v95_v38 = vpop.permute.xlu0 %94 }
  0x87   :  { %v100_v40 = vpop.permute.xlu1 %99 }
  0x8c   :  { %v110_v41 = vpop.permute.xlu0 %109 }
  0x8f   :  { %v115_v47 = vpop.permute.xlu1 %114 }
  0x94   :  { %v125_v48 = vpop.permute.xlu0 %124 }
  0x97   :  { %v130_v58 = vpop.permute.xlu1 %129 }
  0x9c   :  { %v140_v13 = vpop.permute.xlu0 %139 }
  0x9f   :  { %v247_v42 = vpop.f32.mrf.mxu0 }
  0xa0   :  { %v248_v43 = vadd.f32 %v247_v42, %v65_v33  ;;  %v257_v44 = vpop.f32.mrf.mxu1 }
  0xa1   :  { %v258_v45 = vadd.f32 %v257_v44, %v85_v36 }
  0xa2   :  { %287 = vst [vmem:[%s583_s3] sm:$0xff] %v248_v43 }
  0xa3   :  { %291 = vst [vmem:[%s583_s3 + $0x20] sm:$0xff] %v258_v45 }
  0xa6   :  { %v267_v49 = vpop.f32.mrf.mxu2 }
  0xa7   :  { %v268_v50 = vadd.f32 %v267_v49, %v105_v46  ;;  %v277_v51 = vpop.f32.mrf.mxu3  ;;  %v249_v52 = vpop.f32.mrf.mxu0 }
  0xa8   :  { %v278_v53 = vadd.f32 %v277_v51, %v125_v48  ;;  %v250_v54 = vadd.f32 %v249_v52, %v70_v35  ;;  %v259_v55 = vpop.f32.mrf.mxu1 }
  0xa9   :  { %295 = vst [vmem:[%s583_s3 + $0x40] sm:$0xff] %v268_v50  ;;  %v260_v56 = vadd.f32 %v259_v55, %v90_v39 }
  0xaa   :  { %299 = vst [vmem:[%s583_s3 + $0x60] sm:$0xff] %v278_v53 }
  0xab   :  { %288 = vst [vmem:[%s583_s3 + $0x8] sm:$0xff] %v250_v54 }
  0xac   :  { %292 = vst [vmem:[%s583_s3 + $0x28] sm:$0xff] %v260_v56 }
  0xae   :  { %v269_v59 = vpop.f32.mrf.mxu2 }
  0xaf   :  { %v270_v60 = vadd.f32 %v269_v59, %v110_v41  ;;  %v279_v61 = vpop.f32.mrf.mxu3  ;;  %v252_v62 = vpop.f32.mrf.mxu0 }
  0xb0   :  { %v280_v63 = vadd.f32 %v279_v61, %v130_v58  ;;  %v253_v0 = vadd.f32 %v252_v62, %v75_v34  ;;  %v262_v1 = vpop.f32.mrf.mxu1 }
  0xb1   :  { %296 = vst [vmem:[%s583_s3 + $0x48] sm:$0xff] %v270_v60  ;;  %v263_v2 = vadd.f32 %v262_v1, %v95_v38 }
  0xb2   :  { %300 = vst [vmem:[%s583_s3 + $0x68] sm:$0xff] %v280_v63 }
  0xb3   :  { %289 = vst [vmem:[%s583_s3 + $0x10] sm:$0xff] %v253_v0 }
  0xb4   :  { %293 = vst [vmem:[%s583_s3 + $0x30] sm:$0xff] %v263_v2 }
  0xb6   :  { %v272_v4 = vpop.f32.mrf.mxu2 }
  0xb7   :  { %v273_v5 = vadd.f32 %v272_v4, %v115_v47  ;;  %v282_v6 = vpop.f32.mrf.mxu3  ;;  %v254_v7 = vpop.f32.mrf.mxu0 }
  0xb8   :  { %v283_v8 = vadd.f32 %v282_v6, %v135_v3  ;;  %v255_v9 = vadd.f32 %v254_v7, %v80_v37  ;;  %v264_v10 = vpop.f32.mrf.mxu1 }
  0xb9   :  { %297 = vst [vmem:[%s583_s3 + $0x50] sm:$0xff] %v273_v5  ;;  %v265_v11 = vadd.f32 %v264_v10, %v100_v40 }
  0xba   :  { %301 = vst [vmem:[%s583_s3 + $0x70] sm:$0xff] %v283_v8 }
  0xbb   :  { %290 = vst [vmem:[%s583_s3 + $0x18] sm:$0xff] %v255_v9 }
  0xbc   :  { %294 = vst [vmem:[%s583_s3 + $0x38] sm:$0xff] %v265_v11 }
  0xbe   :  { %v274_v12 = vpop.f32.mrf.mxu2 }
  0xbf   :  { %v275_v14 = vadd.f32 %v274_v12, %v120_v57  ;;  %v284_v15 = vpop.f32.mrf.mxu3 }
  0xc0   :  { %v285_v16 = vadd.f32 %v284_v15, %v140_v13 }
  0xc1   :  { %298 = vst [vmem:[%s583_s3 + $0x58] sm:$0xff] %v275_v14 }
  0xc2   :  { %302 = vst [vmem:[%s583_s3 + $0x78] sm:$0xff] %v285_v16 }

</bundles_post_ra>
